<compile_context>
chip_gen: v5e
topology: v5e:2x2
jax: 0.10.0
libtpu: 0.0.40
codegen_flags: <defaults>
</compile_context>

<pallas_src>
import math

import jax
import jax.numpy as jnp
from jax.experimental import pallas as pl
from jax.experimental.pallas import tpu as pltpu

# ---- static configuration (small, consistent with the module's forward) ----
B = 2          # batch_size
S = 8          # slate_length
D = 32         # self.size (model dim)
H = 4          # attention heads
DK = D // H    # per-head dim
FF = 64        # feed-forward hidden dim
T = B * S      # flattened token count
EPS = 1e-6
DTYPE = jnp.float32


def encoder_layer_kernel(
    x_ref, allow_ref,
    wqkv_ref, bqkv_ref, wo_ref, bo_ref,
    ln1_a_ref, ln1_b_ref,
    w1_ref, b1_ref, w2_ref, b2_ref,
    ln2_a_ref, ln2_b_ref,
    o_ref,
):
    x = x_ref[...].astype(jnp.float32)              # (T, D) = (16, 32)
    allowed = allow_ref[...] > 0.5                  # (T, T) block-diag key mask

    def layer_norm(v, a, b):
        # torch.std is unbiased (divides by D-1); eps is added to the std.
        mean = jnp.mean(v, axis=-1, keepdims=True)
        var = jnp.sum((v - mean) ** 2, axis=-1, keepdims=True) / (D - 1)
        std = jnp.sqrt(var)
        return a * (v - mean) / (std + EPS) + b

    # ---------------- sublayer 0: multi-head self-attention ----------------
    xn = layer_norm(x, ln1_a_ref[...], ln1_b_ref[...])

    # Fused QKV projection: one (16,32)x(32,96) MXU push.  1/sqrt(DK) is
    # already folded into the Q columns of wqkv / bqkv host-side.
    qkv = (jnp.dot(xn, wqkv_ref[...], preferred_element_type=jnp.float32)
           + bqkv_ref[...])                         # (T, 3D)

    wo = wo_ref[...]                                # (D, D), loaded once
    acc = jnp.zeros((T, D), jnp.float32)
    for h in range(H):                              # static unroll, H = 4
        lo = h * DK
        qh = qkv[:, lo:lo + DK]                     # (T, DK)
        kh = qkv[:, D + lo:D + lo + DK]             # (T, DK)
        vh = qkv[:, 2 * D + lo:2 * D + lo + DK]     # (T, DK)

        # Scores over the flattened token axis; cross-slate and padded keys are
        # masked to -1e9 -> exactly 0 after softmax (block-diagonal attention),
        # so both slates are handled by one (16,16) matmul per head.
        s = jax.lax.dot_general(qh, kh, (((1,), (1,)), ((), ())),
                                preferred_element_type=jnp.float32)   # (T, T)
        s = jnp.where(allowed, s, -1e9)
        s = s - jnp.max(s, axis=-1, keepdims=True)
        p = jnp.exp(s)
        p = p * pl.reciprocal(jnp.sum(p, axis=-1, keepdims=True), approx=True)

        ctx = jnp.dot(p, vh, preferred_element_type=jnp.float32)      # (T, DK)
        # Fold the output projection per head: no (T, D) concatenate needed.
        acc = acc + jnp.dot(ctx, wo[lo:lo + DK, :],
                            preferred_element_type=jnp.float32)       # (T, D)

    x = x + acc + bo_ref[...]                       # residual (dropout = id)

    # ---------------- sublayer 1: feed-forward ----------------
    xn2 = layer_norm(x, ln2_a_ref[...], ln2_b_ref[...])
    h1 = jnp.maximum(
        jnp.dot(xn2, w1_ref[...], preferred_element_type=jnp.float32)
        + b1_ref[...], 0.0)
    ff = jnp.dot(h1, w2_ref[...], preferred_element_type=jnp.float32) + b2_ref[...]

    o_ref[...] = (x + ff).astype(o_ref.dtype)


def _full(shape):
    # whole (small) array resident in VMEM for the single grid step
    return pl.BlockSpec(shape, lambda *_: (0,) * len(shape))


def encoder_layer(x, mask, params):
    """x: [B, S, D] f32, mask: [B, S] (1 = valid, 0 = padded)."""
    inv_sqrt_dk = 1.0 / math.sqrt(DK)
    # Fuse Q/K/V weights; fold the attention scale into the Q columns/bias.
    w_qkv = jnp.concatenate(
        [params["wq"] * inv_sqrt_dk, params["wk"], params["wv"]], axis=1)   # (D, 3D)
    b_qkv = jnp.concatenate(
        [params["bq"] * inv_sqrt_dk, params["bk"], params["bv"]], axis=1)   # (1, 3D)

    # Block-diagonal "allowed key" matrix over flattened tokens:
    # allow[i, j] = 1 iff tokens i and j are in the same slate and key j is not
    # padded.  Tiny (16,16) one-off host-side prep; keeps iota / integer
    # division out of the kernel.
    tok_slate = jnp.repeat(jnp.arange(B, dtype=jnp.int32), S)               # (T,)
    same_slate = tok_slate[:, None] == tok_slate[None, :]
    key_valid = (mask.reshape(-1) != 0)[None, :]
    allow = (same_slate & key_valid).astype(jnp.float32)                    # (T, T)

    x2d = x.reshape(T, D)   # free metadata reshape; rows are (b*S + s) tokens

    out = pl.pallas_call(
        encoder_layer_kernel,
        out_shape=jax.ShapeDtypeStruct((T, D), x.dtype),
        grid=(1,),
        in_specs=[
            _full((T, D)),                          # x (flattened tokens)
            _full((T, T)),                          # allow mask
            _full((D, 3 * D)), _full((1, 3 * D)),   # fused Wqkv, bqkv
            _full((D, D)), _full((1, D)),           # Wo, bo
            _full((1, D)), _full((1, D)),           # ln1 a, b
            _full((D, FF)), _full((1, FF)),         # W1, b1
            _full((FF, D)), _full((1, D)),          # W2, b2
            _full((1, D)), _full((1, D)),           # ln2 a, b
        ],
        out_specs=_full((T, D)),
        compiler_params=pltpu.CompilerParams(
            dimension_semantics=("arbitrary",)),
    )(
        x2d, allow, w_qkv, b_qkv,
        params["wo"], params["bo"],
        params["ln1_a"], params["ln1_b"],
        params["w1"], params["b1"], params["w2"], params["b2"],
        params["ln2_a"], params["ln2_b"],
    )
    return out.reshape(B, S, D)


# ---------------- pure-JAX reference (for verification) ----------------
def reference_forward(x, mask, p):
    def ln(v, a, b):
        mean = jnp.mean(v, axis=-1, keepdims=True)
        var = jnp.sum((v - mean) ** 2, axis=-1, keepdims=True) / (D - 1)
        return a * (v - mean) / (jnp.sqrt(var) + EPS) + b

    xn = ln(x, p["ln1_a"][0], p["ln1_b"][0])
    q = xn @ p["wq"] + p["bq"][0]
    k = xn @ p["wk"] + p["bk"][0]
    v = xn @ p["wv"] + p["bv"][0]
    qh = q.reshape(B, S, H, DK).transpose(0, 2, 1, 3)
    kh = k.reshape(B, S, H, DK).transpose(0, 2, 1, 3)
    vh = v.reshape(B, S, H, DK).transpose(0, 2, 1, 3)
    scores = jnp.einsum("bhqd,bhkd->bhqk", qh, kh) / math.sqrt(DK)
    scores = jnp.where((mask == 0)[:, None, None, :], -1e9, scores)
    p_attn = jax.nn.softmax(scores, axis=-1)
    attn = jnp.einsum("bhqk,bhkd->bhqd", p_attn, vh)
    attn = attn.transpose(0, 2, 1, 3).reshape(B, S, D)
    attn = attn @ p["wo"] + p["bo"][0]
    x = x + attn
    xn2 = ln(x, p["ln2_a"][0], p["ln2_b"][0])
    ff = jnp.maximum(xn2 @ p["w1"] + p["b1"][0], 0.0) @ p["w2"] + p["b2"][0]
    return x + ff


def init_params(key):
    keys = jax.random.split(key, 8)
    s = 0.05
    return {
        "wq": s * jax.random.normal(keys[0], (D, D), DTYPE),
        "bq": jnp.zeros((1, D), DTYPE),
        "wk": s * jax.random.normal(keys[1], (D, D), DTYPE),
        "bk": jnp.zeros((1, D), DTYPE),
        "wv": s * jax.random.normal(keys[2], (D, D), DTYPE),
        "bv": jnp.zeros((1, D), DTYPE),
        "wo": s * jax.random.normal(keys[3], (D, D), DTYPE),
        "bo": jnp.zeros((1, D), DTYPE),
        "ln1_a": jnp.ones((1, D), DTYPE),
        "ln1_b": jnp.zeros((1, D), DTYPE),
        "w1": s * jax.random.normal(keys[4], (D, FF), DTYPE),
        "b1": 0.01 * jnp.ones((1, FF), DTYPE),
        "w2": s * jax.random.normal(keys[5], (FF, D), DTYPE),
        "b2": 0.01 * jnp.ones((1, D), DTYPE),
        "ln2_a": jnp.ones((1, D), DTYPE),
        "ln2_b": jnp.zeros((1, D), DTYPE),
    }


if __name__ == "__main__":
    key = jax.random.PRNGKey(0)
    kx, kp = jax.random.split(key)

    x = jax.random.normal(kx, (B, S, D), DTYPE)
    # padding mask: 1 = valid, 0 = padded (last two positions of batch 1 padded)
    mask = jnp.ones((B, S), DTYPE).at[1, -2:].set(0.0)
    params = init_params(kp)

    out = jax.block_until_ready(encoder_layer(x, mask, params))
    ref = reference_forward(x, mask, params)

    assert out.shape == (B, S, D)
    # slightly wider tolerance only to absorb the ~1e-5-level deviation from
    # the approximate (EUP) softmax reciprocal; still tight enough to catch bugs
    assert jnp.allclose(out, ref, atol=2e-4, rtol=2e-4), "mismatch vs reference"

    print("KERNEL_OK")
</pallas_src>

<mosaic_0001>
module attributes {stable_mosaic.version = 11 : i64} {
  func.func @encoder_layer_kernel(%arg0: i32, %arg1: memref<16x32xf32, #tpu.memory_space<vmem>>, %arg2: memref<16x16xf32, #tpu.memory_space<vmem>>, %arg3: memref<32x96xf32, #tpu.memory_space<vmem>>, %arg4: memref<1x96xf32, #tpu.memory_space<vmem>>, %arg5: memref<32x32xf32, #tpu.memory_space<vmem>>, %arg6: memref<1x32xf32, #tpu.memory_space<vmem>>, %arg7: memref<1x32xf32, #tpu.memory_space<vmem>>, %arg8: memref<1x32xf32, #tpu.memory_space<vmem>>, %arg9: memref<32x64xf32, #tpu.memory_space<vmem>>, %arg10: memref<1x64xf32, #tpu.memory_space<vmem>>, %arg11: memref<64x32xf32, #tpu.memory_space<vmem>>, %arg12: memref<1x32xf32, #tpu.memory_space<vmem>>, %arg13: memref<1x32xf32, #tpu.memory_space<vmem>>, %arg14: memref<1x32xf32, #tpu.memory_space<vmem>>, %arg15: memref<16x32xf32, #tpu.memory_space<vmem>>) attributes {dimension_semantics = [#tpu.dimension_semantics<arbitrary>], iteration_bounds = array<i64: 1>, scalar_prefetch = 0 : i64, scratch_operands = 0 : i64, tpu.core_type = #tpu.core_type<tc>, window_params = [{pipeline_mode = #tpu.pipeline_mode<synchronous>, transform_indices = @transform_0, window_bounds = array<i64: 16, 32>}, {pipeline_mode = #tpu.pipeline_mode<synchronous>, transform_indices = @transform_1, window_bounds = array<i64: 16, 16>}, {pipeline_mode = #tpu.pipeline_mode<synchronous>, transform_indices = @transform_2, window_bounds = array<i64: 32, 96>}, {pipeline_mode = #tpu.pipeline_mode<synchronous>, transform_indices = @transform_3, window_bounds = array<i64: 1, 96>}, {pipeline_mode = #tpu.pipeline_mode<synchronous>, transform_indices = @transform_4, window_bounds = array<i64: 32, 32>}, {pipeline_mode = #tpu.pipeline_mode<synchronous>, transform_indices = @transform_5, window_bounds = array<i64: 1, 32>}, {pipeline_mode = #tpu.pipeline_mode<synchronous>, transform_indices = @transform_6, window_bounds = array<i64: 1, 32>}, {pipeline_mode = #tpu.pipeline_mode<synchronous>, transform_indices = @transform_7, window_bounds = array<i64: 1, 32>}, {pipeline_mode = #tpu.pipeline_mode<synchronous>, transform_indices = @transform_8, window_bounds = array<i64: 32, 64>}, {pipeline_mode = #tpu.pipeline_mode<synchronous>, transform_indices = @transform_9, window_bounds = array<i64: 1, 64>}, {pipeline_mode = #tpu.pipeline_mode<synchronous>, transform_indices = @transform_10, window_bounds = array<i64: 64, 32>}, {pipeline_mode = #tpu.pipeline_mode<synchronous>, transform_indices = @transform_11, window_bounds = array<i64: 1, 32>}, {pipeline_mode = #tpu.pipeline_mode<synchronous>, transform_indices = @transform_12, window_bounds = array<i64: 1, 32>}, {pipeline_mode = #tpu.pipeline_mode<synchronous>, transform_indices = @transform_13, window_bounds = array<i64: 1, 32>}, {pipeline_mode = #tpu.pipeline_mode<synchronous>, transform_indices = @transform_14, window_bounds = array<i64: 16, 32>}]} {
    %c0 = arith.constant 0 : index
    %c0_0 = arith.constant 0 : index
    %0 = vector.load %arg1[%c0, %c0_0] : memref<16x32xf32, #tpu.memory_space<vmem>>, vector<16x32xf32>
    %c0_1 = arith.constant 0 : index
    %c0_2 = arith.constant 0 : index
    %1 = vector.load %arg2[%c0_1, %c0_2] : memref<16x16xf32, #tpu.memory_space<vmem>>, vector<16x16xf32>
    %cst = arith.constant 5.000000e-01 : f32
    %2 = vector.broadcast %cst : f32 to vector<16x16xf32>
    %3 = arith.cmpf ogt, %1, %2 : vector<16x16xf32>
    %c0_3 = arith.constant 0 : index
    %c0_4 = arith.constant 0 : index
    %4 = vector.load %arg7[%c0_3, %c0_4] : memref<1x32xf32, #tpu.memory_space<vmem>>, vector<1x32xf32>
    %c0_5 = arith.constant 0 : index
    %c0_6 = arith.constant 0 : index
    %5 = vector.load %arg8[%c0_5, %c0_6] : memref<1x32xf32, #tpu.memory_space<vmem>>, vector<1x32xf32>
    %cst_7 = arith.constant dense<0.000000e+00> : vector<16xf32>
    %6 = vector.multi_reduction <add>, %0, %cst_7 [1] : vector<16x32xf32> to vector<16xf32>
    %7 = vector.shape_cast %6 : vector<16xf32> to vector<16x1xf32>
    %cst_8 = arith.constant 3.200000e+01 : f32
    %8 = vector.broadcast %cst_8 : f32 to vector<16x1xf32>
    %9 = arith.divf %7, %8 : vector<16x1xf32>
    %10 = vector.broadcast %9 : vector<16x1xf32> to vector<16x32xf32>
    %11 = arith.subf %0, %10 : vector<16x32xf32>
    %12 = arith.mulf %11, %11 : vector<16x32xf32>
    %cst_9 = arith.constant dense<0.000000e+00> : vector<16xf32>
    %13 = vector.multi_reduction <add>, %12, %cst_9 [1] : vector<16x32xf32> to vector<16xf32>
    %14 = vector.shape_cast %13 : vector<16xf32> to vector<16x1xf32>
    %cst_10 = arith.constant 3.100000e+01 : f32
    %15 = vector.broadcast %cst_10 : f32 to vector<16x1xf32>
    %16 = arith.divf %14, %15 : vector<16x1xf32>
    %17 = math.sqrt %16 : vector<16x1xf32>
    %18 = vector.broadcast %9 : vector<16x1xf32> to vector<16x32xf32>
    %19 = arith.subf %0, %18 : vector<16x32xf32>
    %20 = vector.broadcast %4 : vector<1x32xf32> to vector<16x32xf32>
    %21 = arith.mulf %20, %19 : vector<16x32xf32>
    %cst_11 = arith.constant 9.99999997E-7 : f32
    %22 = vector.broadcast %cst_11 : f32 to vector<16x1xf32>
    %23 = arith.addf %17, %22 : vector<16x1xf32>
    %24 = vector.broadcast %23 : vector<16x1xf32> to vector<16x32xf32>
    %25 = arith.divf %21, %24 : vector<16x32xf32>
    %26 = vector.broadcast %5 : vector<1x32xf32> to vector<16x32xf32>
    %27 = arith.addf %25, %26 : vector<16x32xf32>
    %c0_12 = arith.constant 0 : index
    %c0_13 = arith.constant 0 : index
    %28 = vector.load %arg3[%c0_12, %c0_13] : memref<32x96xf32, #tpu.memory_space<vmem>>, vector<32x96xf32>
    %cst_14 = arith.constant dense<0.000000e+00> : vector<16x96xf32>
    %29 = tpu.matmul %27, %28, %cst_14 {dimension_numbers = #tpu.dot_dimension_numbers<[1], [0], [0], [1], [0, 0, 1, 1], [], []>} : vector<16x32xf32>, vector<32x96xf32>, vector<16x96xf32> -> vector<16x96xf32>
    %c0_15 = arith.constant 0 : index
    %c0_16 = arith.constant 0 : index
    %30 = vector.load %arg4[%c0_15, %c0_16] : memref<1x96xf32, #tpu.memory_space<vmem>>, vector<1x96xf32>
    %31 = vector.broadcast %30 : vector<1x96xf32> to vector<16x96xf32>
    %32 = arith.addf %29, %31 : vector<16x96xf32>
    %c0_17 = arith.constant 0 : index
    %c0_18 = arith.constant 0 : index
    %33 = vector.load %arg5[%c0_17, %c0_18] : memref<32x32xf32, #tpu.memory_space<vmem>>, vector<32x32xf32>
    %cst_19 = arith.constant 0.000000e+00 : f32
    %34 = vector.broadcast %cst_19 : f32 to vector<16x32xf32>
    %35 = vector.extract_strided_slice %32 {offsets = [0, 0], sizes = [16, 8], strides = [1, 1]} : vector<16x96xf32> to vector<16x8xf32>
    %36 = vector.extract_strided_slice %32 {offsets = [0, 32], sizes = [16, 8], strides = [1, 1]} : vector<16x96xf32> to vector<16x8xf32>
    %37 = vector.extract_strided_slice %32 {offsets = [0, 64], sizes = [16, 8], strides = [1, 1]} : vector<16x96xf32> to vector<16x8xf32>
    %cst_20 = arith.constant dense<0.000000e+00> : vector<16x16xf32>
    %38 = tpu.matmul %35, %36, %cst_20 {dimension_numbers = #tpu.dot_dimension_numbers<[1], [1], [0], [0], [0, 0, 1, 0], [], []>} : vector<16x8xf32>, vector<16x8xf32>, vector<16x16xf32> -> vector<16x16xf32>
    %cst_21 = arith.constant -1.000000e+09 : f32
    %39 = vector.broadcast %cst_21 : f32 to vector<16x16xf32>
    %40 = arith.select %3, %38, %39 : vector<16x16xi1>, vector<16x16xf32>
    %cst_22 = arith.constant dense<0xFF800000> : vector<16xf32>
    %41 = vector.multi_reduction <maximumf>, %40, %cst_22 [1] : vector<16x16xf32> to vector<16xf32>
    %42 = vector.shape_cast %41 : vector<16xf32> to vector<16x1xf32>
    %43 = vector.broadcast %42 : vector<16x1xf32> to vector<16x16xf32>
    %44 = arith.subf %40, %43 : vector<16x16xf32>
    %45 = math.exp %44 : vector<16x16xf32>
    %cst_23 = arith.constant dense<0.000000e+00> : vector<16xf32>
    %46 = vector.multi_reduction <add>, %45, %cst_23 [1] : vector<16x16xf32> to vector<16xf32>
    %47 = vector.shape_cast %46 : vector<16xf32> to vector<16x1xf32>
    %48 = tpu.reciprocal %47 {approx = true} : vector<16x1xf32> -> vector<16x1xf32>
    %49 = vector.broadcast %48 : vector<16x1xf32> to vector<16x16xf32>
    %50 = arith.mulf %45, %49 : vector<16x16xf32>
    %cst_24 = arith.constant dense<0.000000e+00> : vector<16x8xf32>
    %51 = tpu.matmul %50, %37, %cst_24 {dimension_numbers = #tpu.dot_dimension_numbers<[1], [0], [0], [1], [0, 0, 1, 1], [], []>} : vector<16x16xf32>, vector<16x8xf32>, vector<16x8xf32> -> vector<16x8xf32>
    %52 = vector.extract_strided_slice %33 {offsets = [0, 0], sizes = [8, 32], strides = [1, 1]} : vector<32x32xf32> to vector<8x32xf32>
    %cst_25 = arith.constant dense<0.000000e+00> : vector<16x32xf32>
    %53 = tpu.matmul %51, %52, %cst_25 {dimension_numbers = #tpu.dot_dimension_numbers<[1], [0], [0], [1], [0, 0, 1, 1], [], []>} : vector<16x8xf32>, vector<8x32xf32>, vector<16x32xf32> -> vector<16x32xf32>
    %54 = arith.addf %34, %53 : vector<16x32xf32>
    %55 = vector.extract_strided_slice %32 {offsets = [0, 8], sizes = [16, 8], strides = [1, 1]} : vector<16x96xf32> to vector<16x8xf32>
    %56 = vector.extract_strided_slice %32 {offsets = [0, 40], sizes = [16, 8], strides = [1, 1]} : vector<16x96xf32> to vector<16x8xf32>
    %57 = vector.extract_strided_slice %32 {offsets = [0, 72], sizes = [16, 8], strides = [1, 1]} : vector<16x96xf32> to vector<16x8xf32>
    %cst_26 = arith.constant dense<0.000000e+00> : vector<16x16xf32>
    %58 = tpu.matmul %55, %56, %cst_26 {dimension_numbers = #tpu.dot_dimension_numbers<[1], [1], [0], [0], [0, 0, 1, 0], [], []>} : vector<16x8xf32>, vector<16x8xf32>, vector<16x16xf32> -> vector<16x16xf32>
    %cst_27 = arith.constant -1.000000e+09 : f32
    %59 = vector.broadcast %cst_27 : f32 to vector<16x16xf32>
    %60 = arith.select %3, %58, %59 : vector<16x16xi1>, vector<16x16xf32>
    %cst_28 = arith.constant dense<0xFF800000> : vector<16xf32>
    %61 = vector.multi_reduction <maximumf>, %60, %cst_28 [1] : vector<16x16xf32> to vector<16xf32>
    %62 = vector.shape_cast %61 : vector<16xf32> to vector<16x1xf32>
    %63 = vector.broadcast %62 : vector<16x1xf32> to vector<16x16xf32>
    %64 = arith.subf %60, %63 : vector<16x16xf32>
    %65 = math.exp %64 : vector<16x16xf32>
    %cst_29 = arith.constant dense<0.000000e+00> : vector<16xf32>
    %66 = vector.multi_reduction <add>, %65, %cst_29 [1] : vector<16x16xf32> to vector<16xf32>
    %67 = vector.shape_cast %66 : vector<16xf32> to vector<16x1xf32>
    %68 = tpu.reciprocal %67 {approx = true} : vector<16x1xf32> -> vector<16x1xf32>
    %69 = vector.broadcast %68 : vector<16x1xf32> to vector<16x16xf32>
    %70 = arith.mulf %65, %69 : vector<16x16xf32>
    %cst_30 = arith.constant dense<0.000000e+00> : vector<16x8xf32>
    %71 = tpu.matmul %70, %57, %cst_30 {dimension_numbers = #tpu.dot_dimension_numbers<[1], [0], [0], [1], [0, 0, 1, 1], [], []>} : vector<16x16xf32>, vector<16x8xf32>, vector<16x8xf32> -> vector<16x8xf32>
    %72 = vector.extract_strided_slice %33 {offsets = [8, 0], sizes = [8, 32], strides = [1, 1]} : vector<32x32xf32> to vector<8x32xf32>
    %cst_31 = arith.constant dense<0.000000e+00> : vector<16x32xf32>
    %73 = tpu.matmul %71, %72, %cst_31 {dimension_numbers = #tpu.dot_dimension_numbers<[1], [0], [0], [1], [0, 0, 1, 1], [], []>} : vector<16x8xf32>, vector<8x32xf32>, vector<16x32xf32> -> vector<16x32xf32>
    %74 = arith.addf %54, %73 : vector<16x32xf32>
    %75 = vector.extract_strided_slice %32 {offsets = [0, 16], sizes = [16, 8], strides = [1, 1]} : vector<16x96xf32> to vector<16x8xf32>
    %76 = vector.extract_strided_slice %32 {offsets = [0, 48], sizes = [16, 8], strides = [1, 1]} : vector<16x96xf32> to vector<16x8xf32>
    %77 = vector.extract_strided_slice %32 {offsets = [0, 80], sizes = [16, 8], strides = [1, 1]} : vector<16x96xf32> to vector<16x8xf32>
    %cst_32 = arith.constant dense<0.000000e+00> : vector<16x16xf32>
    %78 = tpu.matmul %75, %76, %cst_32 {dimension_numbers = #tpu.dot_dimension_numbers<[1], [1], [0], [0], [0, 0, 1, 0], [], []>} : vector<16x8xf32>, vector<16x8xf32>, vector<16x16xf32> -> vector<16x16xf32>
    %cst_33 = arith.constant -1.000000e+09 : f32
    %79 = vector.broadcast %cst_33 : f32 to vector<16x16xf32>
    %80 = arith.select %3, %78, %79 : vector<16x16xi1>, vector<16x16xf32>
    %cst_34 = arith.constant dense<0xFF800000> : vector<16xf32>
    %81 = vector.multi_reduction <maximumf>, %80, %cst_34 [1] : vector<16x16xf32> to vector<16xf32>
    %82 = vector.shape_cast %81 : vector<16xf32> to vector<16x1xf32>
    %83 = vector.broadcast %82 : vector<16x1xf32> to vector<16x16xf32>
    %84 = arith.subf %80, %83 : vector<16x16xf32>
    %85 = math.exp %84 : vector<16x16xf32>
    %cst_35 = arith.constant dense<0.000000e+00> : vector<16xf32>
    %86 = vector.multi_reduction <add>, %85, %cst_35 [1] : vector<16x16xf32> to vector<16xf32>
    %87 = vector.shape_cast %86 : vector<16xf32> to vector<16x1xf32>
    %88 = tpu.reciprocal %87 {approx = true} : vector<16x1xf32> -> vector<16x1xf32>
    %89 = vector.broadcast %88 : vector<16x1xf32> to vector<16x16xf32>
    %90 = arith.mulf %85, %89 : vector<16x16xf32>
    %cst_36 = arith.constant dense<0.000000e+00> : vector<16x8xf32>
    %91 = tpu.matmul %90, %77, %cst_36 {dimension_numbers = #tpu.dot_dimension_numbers<[1], [0], [0], [1], [0, 0, 1, 1], [], []>} : vector<16x16xf32>, vector<16x8xf32>, vector<16x8xf32> -> vector<16x8xf32>
    %92 = vector.extract_strided_slice %33 {offsets = [16, 0], sizes = [8, 32], strides = [1, 1]} : vector<32x32xf32> to vector<8x32xf32>
    %cst_37 = arith.constant dense<0.000000e+00> : vector<16x32xf32>
    %93 = tpu.matmul %91, %92, %cst_37 {dimension_numbers = #tpu.dot_dimension_numbers<[1], [0], [0], [1], [0, 0, 1, 1], [], []>} : vector<16x8xf32>, vector<8x32xf32>, vector<16x32xf32> -> vector<16x32xf32>
    %94 = arith.addf %74, %93 : vector<16x32xf32>
    %95 = vector.extract_strided_slice %32 {offsets = [0, 24], sizes = [16, 8], strides = [1, 1]} : vector<16x96xf32> to vector<16x8xf32>
    %96 = vector.extract_strided_slice %32 {offsets = [0, 56], sizes = [16, 8], strides = [1, 1]} : vector<16x96xf32> to vector<16x8xf32>
    %97 = vector.extract_strided_slice %32 {offsets = [0, 88], sizes = [16, 8], strides = [1, 1]} : vector<16x96xf32> to vector<16x8xf32>
    %cst_38 = arith.constant dense<0.000000e+00> : vector<16x16xf32>
    %98 = tpu.matmul %95, %96, %cst_38 {dimension_numbers = #tpu.dot_dimension_numbers<[1], [1], [0], [0], [0, 0, 1, 0], [], []>} : vector<16x8xf32>, vector<16x8xf32>, vector<16x16xf32> -> vector<16x16xf32>
    %cst_39 = arith.constant -1.000000e+09 : f32
    %99 = vector.broadcast %cst_39 : f32 to vector<16x16xf32>
    %100 = arith.select %3, %98, %99 : vector<16x16xi1>, vector<16x16xf32>
    %cst_40 = arith.constant dense<0xFF800000> : vector<16xf32>
    %101 = vector.multi_reduction <maximumf>, %100, %cst_40 [1] : vector<16x16xf32> to vector<16xf32>
    %102 = vector.shape_cast %101 : vector<16xf32> to vector<16x1xf32>
    %103 = vector.broadcast %102 : vector<16x1xf32> to vector<16x16xf32>
    %104 = arith.subf %100, %103 : vector<16x16xf32>
    %105 = math.exp %104 : vector<16x16xf32>
    %cst_41 = arith.constant dense<0.000000e+00> : vector<16xf32>
    %106 = vector.multi_reduction <add>, %105, %cst_41 [1] : vector<16x16xf32> to vector<16xf32>
    %107 = vector.shape_cast %106 : vector<16xf32> to vector<16x1xf32>
    %108 = tpu.reciprocal %107 {approx = true} : vector<16x1xf32> -> vector<16x1xf32>
    %109 = vector.broadcast %108 : vector<16x1xf32> to vector<16x16xf32>
    %110 = arith.mulf %105, %109 : vector<16x16xf32>
    %cst_42 = arith.constant dense<0.000000e+00> : vector<16x8xf32>
    %111 = tpu.matmul %110, %97, %cst_42 {dimension_numbers = #tpu.dot_dimension_numbers<[1], [0], [0], [1], [0, 0, 1, 1], [], []>} : vector<16x16xf32>, vector<16x8xf32>, vector<16x8xf32> -> vector<16x8xf32>
    %112 = vector.extract_strided_slice %33 {offsets = [24, 0], sizes = [8, 32], strides = [1, 1]} : vector<32x32xf32> to vector<8x32xf32>
    %cst_43 = arith.constant dense<0.000000e+00> : vector<16x32xf32>
    %113 = tpu.matmul %111, %112, %cst_43 {dimension_numbers = #tpu.dot_dimension_numbers<[1], [0], [0], [1], [0, 0, 1, 1], [], []>} : vector<16x8xf32>, vector<8x32xf32>, vector<16x32xf32> -> vector<16x32xf32>
    %114 = arith.addf %94, %113 : vector<16x32xf32>
    %115 = arith.addf %0, %114 : vector<16x32xf32>
    %c0_44 = arith.constant 0 : index
    %c0_45 = arith.constant 0 : index
    %116 = vector.load %arg6[%c0_44, %c0_45] : memref<1x32xf32, #tpu.memory_space<vmem>>, vector<1x32xf32>
    %117 = vector.broadcast %116 : vector<1x32xf32> to vector<16x32xf32>
    %118 = arith.addf %115, %117 : vector<16x32xf32>
    %c0_46 = arith.constant 0 : index
    %c0_47 = arith.constant 0 : index
    %119 = vector.load %arg13[%c0_46, %c0_47] : memref<1x32xf32, #tpu.memory_space<vmem>>, vector<1x32xf32>
    %c0_48 = arith.constant 0 : index
    %c0_49 = arith.constant 0 : index
    %120 = vector.load %arg14[%c0_48, %c0_49] : memref<1x32xf32, #tpu.memory_space<vmem>>, vector<1x32xf32>
    %cst_50 = arith.constant dense<0.000000e+00> : vector<16xf32>
    %121 = vector.multi_reduction <add>, %118, %cst_50 [1] : vector<16x32xf32> to vector<16xf32>
    %122 = vector.shape_cast %121 : vector<16xf32> to vector<16x1xf32>
    %cst_51 = arith.constant 3.200000e+01 : f32
    %123 = vector.broadcast %cst_51 : f32 to vector<16x1xf32>
    %124 = arith.divf %122, %123 : vector<16x1xf32>
    %125 = vector.broadcast %124 : vector<16x1xf32> to vector<16x32xf32>
    %126 = arith.subf %118, %125 : vector<16x32xf32>
    %127 = arith.mulf %126, %126 : vector<16x32xf32>
    %cst_52 = arith.constant dense<0.000000e+00> : vector<16xf32>
    %128 = vector.multi_reduction <add>, %127, %cst_52 [1] : vector<16x32xf32> to vector<16xf32>
    %129 = vector.shape_cast %128 : vector<16xf32> to vector<16x1xf32>
    %cst_53 = arith.constant 3.100000e+01 : f32
    %130 = vector.broadcast %cst_53 : f32 to vector<16x1xf32>
    %131 = arith.divf %129, %130 : vector<16x1xf32>
    %132 = math.sqrt %131 : vector<16x1xf32>
    %133 = vector.broadcast %124 : vector<16x1xf32> to vector<16x32xf32>
    %134 = arith.subf %118, %133 : vector<16x32xf32>
    %135 = vector.broadcast %119 : vector<1x32xf32> to vector<16x32xf32>
    %136 = arith.mulf %135, %134 : vector<16x32xf32>
    %cst_54 = arith.constant 9.99999997E-7 : f32
    %137 = vector.broadcast %cst_54 : f32 to vector<16x1xf32>
    %138 = arith.addf %132, %137 : vector<16x1xf32>
    %139 = vector.broadcast %138 : vector<16x1xf32> to vector<16x32xf32>
    %140 = arith.divf %136, %139 : vector<16x32xf32>
    %141 = vector.broadcast %120 : vector<1x32xf32> to vector<16x32xf32>
    %142 = arith.addf %140, %141 : vector<16x32xf32>
    %c0_55 = arith.constant 0 : index
    %c0_56 = arith.constant 0 : index
    %143 = vector.load %arg9[%c0_55, %c0_56] : memref<32x64xf32, #tpu.memory_space<vmem>>, vector<32x64xf32>
    %cst_57 = arith.constant dense<0.000000e+00> : vector<16x64xf32>
    %144 = tpu.matmul %142, %143, %cst_57 {dimension_numbers = #tpu.dot_dimension_numbers<[1], [0], [0], [1], [0, 0, 1, 1], [], []>} : vector<16x32xf32>, vector<32x64xf32>, vector<16x64xf32> -> vector<16x64xf32>
    %c0_58 = arith.constant 0 : index
    %c0_59 = arith.constant 0 : index
    %145 = vector.load %arg10[%c0_58, %c0_59] : memref<1x64xf32, #tpu.memory_space<vmem>>, vector<1x64xf32>
    %146 = vector.broadcast %145 : vector<1x64xf32> to vector<16x64xf32>
    %147 = arith.addf %144, %146 : vector<16x64xf32>
    %cst_60 = arith.constant 0.000000e+00 : f32
    %148 = vector.broadcast %cst_60 : f32 to vector<16x64xf32>
    %149 = arith.maximumf %147, %148 : vector<16x64xf32>
    %c0_61 = arith.constant 0 : index
    %c0_62 = arith.constant 0 : index
    %150 = vector.load %arg11[%c0_61, %c0_62] : memref<64x32xf32, #tpu.memory_space<vmem>>, vector<64x32xf32>
    %cst_63 = arith.constant dense<0.000000e+00> : vector<16x32xf32>
    %151 = tpu.matmul %149, %150, %cst_63 {dimension_numbers = #tpu.dot_dimension_numbers<[1], [0], [0], [1], [0, 0, 1, 1], [], []>} : vector<16x64xf32>, vector<64x32xf32>, vector<16x32xf32> -> vector<16x32xf32>
    %c0_64 = arith.constant 0 : index
    %c0_65 = arith.constant 0 : index
    %152 = vector.load %arg12[%c0_64, %c0_65] : memref<1x32xf32, #tpu.memory_space<vmem>>, vector<1x32xf32>
    %153 = vector.broadcast %152 : vector<1x32xf32> to vector<16x32xf32>
    %154 = arith.addf %151, %153 : vector<16x32xf32>
    %155 = arith.addf %118, %154 : vector<16x32xf32>
    %c0_66 = arith.constant 0 : index
    %c0_67 = arith.constant 0 : index
    %156 = vector.load %arg15[%c0_66, %c0_67] : memref<16x32xf32, #tpu.memory_space<vmem>>, vector<16x32xf32>
    tpu.vector_store %arg15[%c0_66, %c0_67], %155 {strides = array<i32>} : memref<16x32xf32, #tpu.memory_space<vmem>>, vector<16x32xf32>,
    return
  }
  func.func @transform_0(%arg0: i32) -> (i32, i32) {
    %c0_i32 = arith.constant 0 : i32
    %c0_i32_0 = arith.constant 0 : i32
    %c0_i32_1 = arith.constant 0 : i32
    return %c0_i32, %c0_i32_0 : i32, i32
  }
  func.func @transform_1(%arg0: i32) -> (i32, i32) {
    %c0_i32 = arith.constant 0 : i32
    %c0_i32_0 = arith.constant 0 : i32
    %c0_i32_1 = arith.constant 0 : i32
    return %c0_i32, %c0_i32_0 : i32, i32
  }
  func.func @transform_2(%arg0: i32) -> (i32, i32) {
    %c0_i32 = arith.constant 0 : i32
    %c0_i32_0 = arith.constant 0 : i32
    %c0_i32_1 = arith.constant 0 : i32
    return %c0_i32, %c0_i32_0 : i32, i32
  }
  func.func @transform_3(%arg0: i32) -> (i32, i32) {
    %c0_i32 = arith.constant 0 : i32
    %c0_i32_0 = arith.constant 0 : i32
    %c0_i32_1 = arith.constant 0 : i32
    return %c0_i32, %c0_i32_0 : i32, i32
  }
  func.func @transform_4(%arg0: i32) -> (i32, i32) {
    %c0_i32 = arith.constant 0 : i32
    %c0_i32_0 = arith.constant 0 : i32
    %c0_i32_1 = arith.constant 0 : i32
    return %c0_i32, %c0_i32_0 : i32, i32
  }
  func.func @transform_5(%arg0: i32) -> (i32, i32) {
    %c0_i32 = arith.constant 0 : i32
    %c0_i32_0 = arith.constant 0 : i32
    %c0_i32_1 = arith.constant 0 : i32
    return %c0_i32, %c0_i32_0 : i32, i32
  }
  func.func @transform_6(%arg0: i32) -> (i32, i32) {
    %c0_i32 = arith.constant 0 : i32
    %c0_i32_0 = arith.constant 0 : i32
    %c0_i32_1 = arith.constant 0 : i32
    return %c0_i32, %c0_i32_0 : i32, i32
  }
  func.func @transform_7(%arg0: i32) -> (i32, i32) {
    %c0_i32 = arith.constant 0 : i32
    %c0_i32_0 = arith.constant 0 : i32
    %c0_i32_1 = arith.constant 0 : i32
    return %c0_i32, %c0_i32_0 : i32, i32
  }
  func.func @transform_8(%arg0: i32) -> (i32, i32) {
    %c0_i32 = arith.constant 0 : i32
    %c0_i32_0 = arith.constant 0 : i32
    %c0_i32_1 = arith.constant 0 : i32
    return %c0_i32, %c0_i32_0 : i32, i32
  }
  func.func @transform_9(%arg0: i32) -> (i32, i32) {
    %c0_i32 = arith.constant 0 : i32
    %c0_i32_0 = arith.constant 0 : i32
    %c0_i32_1 = arith.constant 0 : i32
    return %c0_i32, %c0_i32_0 : i32, i32
  }
  func.func @transform_10(%arg0: i32) -> (i32, i32) {
    %c0_i32 = arith.constant 0 : i32
    %c0_i32_0 = arith.constant 0 : i32
    %c0_i32_1 = arith.constant 0 : i32
    return %c0_i32, %c0_i32_0 : i32, i32
  }
  func.func @transform_11(%arg0: i32) -> (i32, i32) {
    %c0_i32 = arith.constant 0 : i32
    %c0_i32_0 = arith.constant 0 : i32
    %c0_i32_1 = arith.constant 0 : i32
    return %c0_i32, %c0_i32_0 : i32, i32
  }
  func.func @transform_12(%arg0: i32) -> (i32, i32) {
    %c0_i32 = arith.constant 0 : i32
    %c0_i32_0 = arith.constant 0 : i32
    %c0_i32_1 = arith.constant 0 : i32
    return %c0_i32, %c0_i32_0 : i32, i32
  }
  func.func @transform_13(%arg0: i32) -> (i32, i32) {
    %c0_i32 = arith.constant 0 : i32
    %c0_i32_0 = arith.constant 0 : i32
    %c0_i32_1 = arith.constant 0 : i32
    return %c0_i32, %c0_i32_0 : i32, i32
  }
  func.func @transform_14(%arg0: i32) -> (i32, i32) {
    %c0_i32 = arith.constant 0 : i32
    %c0_i32_0 = arith.constant 0 : i32
    %c0_i32_1 = arith.constant 0 : i32
    return %c0_i32, %c0_i32_0 : i32, i32
  }
}

</mosaic_0001>

<bundles_post_ra>
// kernel: tpu_custom_call.1
= control target key start
LH: loop header
LB: loop body
LE: loop exit
PB: predicated region body
PF: predicated region fallthrough
CT: control target
= control target key end

     0   :  { %19 = vsyncpa [#allocation3], 0  ;;  %s1530_s0 = inlined_call_operand.hbm [shape: f32[16,32], index: 0, kind: input, shape index: {}]   ;;  %s1531_s1 = inlined_call_operand.hbm [shape: f32[16,16], index: 1, kind: input, shape index: {}]   ;;  %s1532_s2 = inlined_call_operand.vmem [shape: f32[32,96], index: 2, kind: input, shape index: {}]   ;;  %s1533_s3 = inlined_call_operand.vmem [shape: f32[1,96], index: 3, kind: input, shape index: {}]   ;;  %s1534_s4 = inlined_call_operand.vmem [shape: f32[32,32], index: 4, kind: input, shape index: {}]   ;;  %s1535_s5 = inlined_call_operand.vmem [shape: f32[1,32], index: 5, kind: input, shape index: {}]   ;;  %s1536_s6 = inlined_call_operand.vmem [shape: f32[1,32], index: 6, kind: input, shape index: {}]   ;;  %s1537_s7 = inlined_call_operand.vmem [shape: f32[1,32], index: 7, kind: input, shape index: {}]   ;;  %s1538_s8 = inlined_call_operand.vmem [shape: f32[32,64], index: 8, kind: input, shape index: {}]   ;;  %s1539_s9 = inlined_call_operand.vmem [shape: f32[1,64], index: 9, kind: input, shape index: {}]   ;;  %s1540_s10 = inlined_call_operand.vmem [shape: f32[64,32], index: 10, kind: input, shape index: {}]   ;;  %s1541_s11 = inlined_call_operand.vmem [shape: f32[1,32], index: 11, kind: input, shape index: {}]   ;;  %s1542_s12 = inlined_call_operand.vmem [shape: f32[1,32], index: 12, kind: input, shape index: {}]   ;;  %s1543_s13 = inlined_call_operand.vmem [shape: f32[1,32], index: 13, kind: input, shape index: {}]   ;;  %s1544_s14 = inlined_call_operand.hbm [shape: f32[16,32], index: 14, kind: output, shape index: {}]  }
   0x1   :  { %20 = vsyncpa [#allocation6], 0 }
   0x2   :  { %21 = vsyncpa [#allocation4], 0  ;;  %s26_s15 = sshll.u32 %s1530_s0, 4  ;;  %s1161_s16 = smov [#allocation2]   ;;  %s27_s15 = int_to_ptr.hbm [resolvable:$true] %s26_s15 }
   0x3   :  { %s28_s17 = sshll.u32 %s1161_s16, 4  ;;  %s39_s20 = sshll.u32 %s1531_s1, 4  ;;  %s29_s17 = int_to_ptr.vmem [resolvable:$true] %s28_s17  ;;  %s40_s20 = int_to_ptr.hbm [resolvable:$true] %s39_s20 }
   0x4   :  { %s1162_s21 = smov 128   ;;  %s1163_s22 = smov 8  }
   0x5   :  { %34 = dma.hbm_to_vmem [thread:$0]  %s27_s15, 256, %s29_s17, [#allocation3], %s1162_s21, %s1162_s21, %s1163_s22  }
   0x6   :  { %s1164_s23 = smov [#allocation5]  }
   0x7   :  { %s41_s24 = sshll.u32 %s1164_s23, 4  ;;  %s42_s24 = int_to_ptr.vmem [resolvable:$true] %s41_s24 }
   0x8   :  { %47 = dma.hbm_to_vmem [thread:$0]  %s40_s20, 256, %s42_s24, [#allocation6], %s1162_s21, %s1162_s21, %s1163_s22  }
   0x9   :  { %1155 = dma.done.wait [#allocation3], 256  }
   0xa   :  { %1156 = vsyncadd [#allocation3], 4294967040 }
   0xb   :  { %1157 = dma.done.wait [#allocation6], 256  }
   0xc   :  { %1158 = vsyncadd [#allocation6], 4294967040  ;;  %vm88_vm0 = vcmask 261120   ;;  %v1266_v0 = vld [vmem:[#allocation2 + $0x8] sm:$0xff]  ;;  %v1270_v2 = vld [vmem:[#allocation2] sm:$0xff]  ;;  %v1165_v4 = vmov 32.0  }
   0xd   :  { %v92_v1 = vsel %vm88_vm0, %v1266_v0, 0.0  ;;  %v89_v3 = vsel %vm88_vm0, %v1270_v2, 0.0  ;;  %1031 = vrcp.f32 %v1165_v4  ;;  %v1166_v21 = vmov 31.0   ;;  %v192_v27 = vld [vmem:[%s1532_s2 + $0x18] sm:$0xff]  ;;  %v191_v28 = vld [vmem:[%s1532_s2 + $0x10] sm:$0xff]  ;;  %v190_v30 = vld [vmem:[%s1532_s2 + $0x8] sm:$0xff] }
   0xe   :  { %93 = vadd.xlane.f32.xlu0 %v92_v1  ;;  %1033 = vrcp.f32 %v1166_v21  ;;  %981 = vmatpush.msra.mxu3 %v192_v27  ;;  %v189_v32 = vld [vmem:[%s1532_s2] sm:$0xff]  ;;  %s1167_s18 = smov 96   ;;  %vm236_vm15 = vcmask 64512   ;;  %s1169_s19 = smov 88  }
   0xf   :  { %215 = vmatpush.msra.mxu0 %v192_v27  ;;  %v1023_v62 = vld [vmem:[%s1536_s6] ss:$0 sm:$0xff]  ;;  %s1170_s20 = smov 120   ;;  %s1171_s23 = smov 72  }
  0x10   :  { %982 = vmatpush.msra.mxu3 %v191_v28  ;;  %s1172_s24 = smov 104   ;;  %s1173_s25 = smov 80  }
  0x11   :  { %216 = vmatpush.msra.mxu0 %v191_v28  ;;  %s1174_s26 = smov 112   ;;  %s1175_s27 = smov 56  }
  0x12   :  { %983 = vmatpush.msra.mxu3 %v190_v30  ;;  %s1176_s28 = smov 48   ;;  %s1177_s29 = smov 40  }
  0x13   :  { %v1032_v5 = vpop.eup %1031  ;;  %217 = vmatpush.msra.mxu0 %v190_v30  ;;  %s929_s1 = sshll.u32 %s1544_s14, 4  ;;  %s930_s1 = int_to_ptr.hbm [resolvable:$true] %s929_s1 }
  0x14   :  { %v96_v6 = vmul.f32 32.0, %v1032_v5  ;;  %vm100_vm1 = vweird.f32 %v1032_v5  ;;  %v1034_v22 = vpop.eup %1033  ;;  %984 = vmatpush.msra.mxu3 %v189_v32 }
  0x15   :  { %v115_v23 = vmul.f32 31.0, %v1034_v22  ;;  %vm119_vm2 = vweird.f32 %v1034_v22  ;;  %218 = vmatpush.msra.mxu0 %v189_v32 }
  0x16   :  { %90 = vadd.xlane.f32.xlu0 %v89_v3  ;;  %v97_v7 = vsub.f32 1.0, %v96_v6 }
  0x17   :  { %v116_v24 = vsub.f32 1.0, %v115_v23 }
  0x18   :  { %v98_v8 = vmul.f32 %v1032_v5, %v97_v7 }
  0x19   :  { %v117_v25 = vmul.f32 %v1034_v22, %v116_v24 }
  0x1a   :  { %v99_v9 = vadd.f32 %v1032_v5, %v98_v8  ;;  %v1024_v8 = vld [vmem:[%s1537_s7] ss:$0 sm:$0xff] }
  0x1b   :  { %v118_v26 = vadd.f32 %v1034_v22, %v117_v25 }
  0x1c   :  { %v1274_v10 = vsel %vm100_vm1, %v1032_v5, %v99_v9 }
  0x1d   :  { %v1296_v29 = vsel %vm119_vm2, %v1034_v22, %v118_v26  ;;  %v1025_v26 = vld [vmem:[%s1533_s3] ss:$0 sm:$0xff]  ;;  %vm270_vm2 = vcmask 130048   ;;  %s1168_s3 = smov 64  }
  0x81   :  { %v94_v11 = vpop.xlane.xlu0 %93 }
  0x82   :  { %v103_v12 = vmul.f32 %v1274_v10, %v94_v11 }
  0x84   :  { %v1278_v13 = vsub.f32 %v1266_v0, %v103_v12 }
  0x86   :  { %v107_v14 = vmul.f32 %v1278_v13, %v1278_v13  ;;  %v151_v6 = vmul.f32 %v1023_v62, %v1278_v13 }
  0x88   :  { %v111_v15 = vsel %vm88_vm0, %v107_v14, 0.0 }
  0x89   :  { %112 = vadd.xlane.f32.xlu1 %v111_v15  ;;  %v91_v16 = vpop.xlane.xlu0 %90 }
  0x8a   :  { %v102_v17 = vmul.f32 %v1274_v10, %v91_v16 }
  0x8c   :  { %v1285_v18 = vsub.f32 %v1270_v2, %v102_v17 }
  0x8e   :  { %v106_v19 = vmul.f32 %v1285_v18, %v1285_v18  ;;  %v150_v21 = vmul.f32 %v1023_v62, %v1285_v18 }
  0x90   :  { %v108_v20 = vsel %vm88_vm0, %v106_v19, 0.0 }
  0x91   :  { %109 = vadd.xlane.f32.xlu1 %v108_v20 }
  0xfc   :  { %v113_v31 = vpop.xlane.xlu1 %112 }
  0xfd   :  { %v122_v33 = vmul.f32 %v1296_v29, %v113_v31 }
  0xff   :  { %1035 = vrsqrt.f32 %v122_v33  ;;  %vm142_vm3 = vcmp.eq.f32.partialorder %v122_v33, inf  ;;  %v145_v46 = vand.u32 2147483648, %v122_v33  ;;  %vm144_vm4 = vcmp.eq.f32.partialorder %v122_v33, 0.0 }
 0x104   :  { %v110_v34 = vpop.xlane.xlu1 %109 }
 0x105   :  { %v1036_v35 = vpop.eup %1035  ;;  %v121_v36 = vmul.f32 %v1296_v29, %v110_v34 }
 0x106   :  { %v136_v37 = vmul.f32 %v1036_v35, %v122_v33 }
 0x107   :  { %1037 = vrsqrt.f32 %v121_v36  ;;  %vm130_vm5 = vcmp.eq.f32.partialorder %v121_v36, inf  ;;  %v133_v54 = vand.u32 2147483648, %v121_v36  ;;  %vm132_vm6 = vcmp.eq.f32.partialorder %v121_v36, 0.0 }
 0x108   :  { %v137_v38 = vmul.f32 %v1036_v35, %v136_v37  ;;  %v1337_v37 = vld [vmem:[#allocation5 + $0x8] sm:$0xff] }
 0x10a   :  { %v138_v39 = vmul.f32 0.5, %v137_v38 }
 0x10c   :  { %v139_v40 = vsub.f32 1.5, %v138_v39 }
 0x10d   :  { %v1038_v41 = vpop.eup %1037 }
 0x10e   :  { %v140_v42 = vmul.f32 %v1036_v35, %v139_v40  ;;  %v124_v43 = vmul.f32 %v1038_v41, %v121_v36 }
 0x110   :  { %v141_v44 = vmul.f32 %v140_v42, %v122_v33  ;;  %v125_v45 = vmul.f32 %v1038_v41, %v124_v43 }
 0x112   :  { %v126_v47 = vmul.f32 0.5, %v125_v45  ;;  %v143_v48 = vsel %vm142_vm3, %v122_v33, %v141_v44  ;;  %v1331_v33 = vld [vmem:[#allocation5] sm:$0xff]  ;;  %vm85_vm3 = vcmp.gt.f32.partialorder %v1337_v37, 0.5  ;;  %v226_v45 = vld [vmem:[%s1534_s4] sm:$0xff] }
 0x113   :  { %v146_v49 = vsel %vm144_vm4, %v145_v46, %v143_v48  ;;  %vm84_vm1 = vcmp.gt.f32.partialorder %v1331_v33, 0.5 }
 0x114   :  { %v127_v50 = vsub.f32 1.5, %v126_v47  ;;  %v153_v51 = vadd.f32 1e-06, %v146_v49 }
 0x116   :  { %v128_v52 = vmul.f32 %v1038_v41, %v127_v50  ;;  %1039 = vrcp.f32 %v153_v51  ;;  %v180_v61 = vand.u32 2147483648, %v153_v51  ;;  %v178_v1 = vand.u32 2147483647, %v153_v51 }
 0x117   :  { %vm174_vm8 = vweird.f32 %v153_v51 }
 0x118   :  { %v129_v53 = vmul.f32 %v128_v52, %v121_v36  ;;  %v181_v5 = vor.u32 1.1754944e-38, %v180_v61  ;;  %vm179_vm10 = vcmp.eq.f32.partialorder %v178_v1, 8.507059e+37 }
 0x11a   :  { %v131_v55 = vsel %vm130_vm5, %v121_v36, %v129_v53 }
 0x11b   :  { %v134_v56 = vsel %vm132_vm6, %v133_v54, %v131_v55 }
 0x11c   :  { %v1040_v57 = vpop.eup %1039  ;;  %v152_v58 = vadd.f32 1e-06, %v134_v56 }
 0x11d   :  { %v170_v59 = vmul.f32 %v1040_v57, %v153_v51  ;;  %vm175_vm7 = vweird.f32 %v1040_v57 }
 0x11e   :  { %1041 = vrcp.f32 %v152_v58  ;;  %vm176_vm9 = vmor %vm174_vm8, %vm175_vm7  ;;  %v165_v15 = vand.u32 2147483648, %v152_v58  ;;  %v163_v19 = vand.u32 2147483647, %v152_v58  ;;  %vm159_vm12 = vweird.f32 %v152_v58 }
 0x11f   :  { %v171_v60 = vsub.f32 1.0, %v170_v59 }
 0x120   :  { %v166_v13 = vor.u32 1.1754944e-38, %v165_v15  ;;  %vm164_vm14 = vcmp.eq.f32.partialorder %v163_v19, 8.507059e+37 }
 0x121   :  { %v172_v63 = vmul.f32 %v1040_v57, %v171_v60 }
 0x123   :  { %v173_v3 = vadd.f32 %v1040_v57, %v172_v63 }
 0x124   :  { %v1042_v4 = vpop.eup %1041 }
 0x125   :  { %v177_v7 = vsel %vm176_vm9, %v1040_v57, %v173_v3  ;;  %v155_v9 = vmul.f32 %v1042_v4, %v152_v58  ;;  %vm160_vm11 = vweird.f32 %v1042_v4 }
 0x126   :  { %v182_v11 = vsel %vm179_vm10, %v181_v5, %v177_v7  ;;  %vm161_vm13 = vmor %vm159_vm12, %vm160_vm11 }
 0x127   :  { %v183_v12 = vmul.f32 %v182_v11, %v151_v6  ;;  %v156_v14 = vsub.f32 1.0, %v155_v9 }
 0x129   :  { %v188_v16 = vadd.f32 %v1024_v8, %v183_v12  ;;  %v157_v17 = vmul.f32 %v1042_v4, %v156_v14 }
 0x12b   :  { %944 = vmatmul.msk.f32.vlgmr.msra.gmra.mxu3 %vm88_vm0, %v188_v16  ;;  %v158_v20 = vadd.f32 %v1042_v4, %v157_v17 }
 0x12d   :  { %v162_v22 = vsel %vm161_vm13, %v1042_v4, %v158_v20 }
 0x12e   :  { %v167_v23 = vsel %vm164_vm14, %v166_v13, %v162_v22 }
 0x12f   :  { %v168_v24 = vmul.f32 %v167_v23, %v150_v21 }
 0x131   :  { %v187_v25 = vadd.f32 %v1024_v8, %v168_v24 }
 0x133   :  { %943 = vmatmul.msk.f32.vlgmr.msra.gmra.mxu0 %vm88_vm0, %v187_v25 }
 0x1ae   :  { %v223_v27 = vpop.f32.mrf.mxu3 }
 0x1af   :  { %v1319_v28 = vadd.f32 %v1025_v26, %v223_v27 }
 0x1b0   :  { %v220_v30 = vpop.f32.mrf.mxu0 }
 0x1b1   :  { %234 = vrot.lane.b32.xlu2 %v1319_v28, %s1167_s18  ;;  %v1322_v31 = vadd.f32 %v1025_v26, %v220_v30 }
 0x1b3   :  { %v1345_v41 = vpack.i.bf16 %v1322_v31, %v1319_v28 }
 0x1b9   :  { %232 = vrot.lane.b32.xlu2 %v1322_v31, %s1167_s18 }
 0x20b   :  { %v235_v18 = vpop.permute.xlu2 %234 }
 0x20c   :  { %945 = vmatpush.xpose.msk.msra.mxu1 %vm236_vm15, %v235_v18 }
 0x213   :  { %v233_v32 = vpop.permute.xlu2 %232 }
 0x214   :  { %946 = vmatpush.xpose.msk.msra.mxu1 %vm236_vm15, %v233_v32 }
 0x217   :  { %947 = vmatmul.msk.f32.vlgmr.msra.gmra.mxu1 %vm236_vm15, %v1322_v31 }
 0x218   :  { %476 = vmatpush.msrb.mxu1 %v226_v45 }
 0x21f   :  { %948 = vmatmul.msk.f32.gmra.mxu1 %vm236_vm15, %v1319_v28 }
 0x294   :  { %v262_v34 = vpop.f32.mrf.mxu1 }
 0x295   :  { %v268_v35 = vsel %vm84_vm1, %v262_v34, -1e+09 }
 0x296   :  { %v271_v36 = vsel %vm270_vm2, %v268_v35, -inf }
 0x297   :  { %272 = vmax.xlane.f32.xlu0 %v271_v36 }
 0x29c   :  { %v265_v38 = vpop.f32.mrf.mxu1 }
 0x29d   :  { %v269_v39 = vsel %vm85_vm3, %v265_v38, -1e+09 }
 0x29e   :  { %v274_v40 = vsel %vm270_vm2, %v269_v39, -inf }
 0x29f   :  { %275 = vmax.xlane.f32.xlu1 %v274_v40 }
 0x2ab   :  { %1004 = vrot.lane.b32.xlu0 %v1345_v41, %s1168_s3 }
 0x2b3   :  { %332 = vrot.lane.b32.xlu0 %v1322_v31, %s1169_s19 }
 0x2bb   :  { %328 = vrot.lane.b32.xlu0 %v1322_v31, %s1170_s20 }
 0x2c3   :  { %619 = vrot.lane.b32.xlu0 %v1319_v28, %s1171_s23 }
 0x2cb   :  { %617 = vrot.lane.b32.xlu0 %v1322_v31, %s1171_s23 }
 0x2d3   :  { %613 = vrot.lane.b32.xlu0 %v1322_v31, %s1172_s24 }
 0x30a   :  { %v273_v42 = vpop.xlane.xlu0 %272 }
 0x30b   :  { %v277_v43 = vsub.f32 %v268_v35, %v273_v42 }
 0x30d   :  { %v279_v44 = vmul.f32 1.442695, %v277_v43 }
 0x30f   :  { %1043 = vpow2.f32 %v279_v44 }
 0x312   :  { %v276_v46 = vpop.xlane.xlu1 %275 }
 0x313   :  { %v278_v47 = vsub.f32 %v269_v39, %v276_v46 }
 0x315   :  { %v1044_v48 = vpop.eup %1043  ;;  %v281_v49 = vmul.f32 1.442695, %v278_v47 }
 0x316   :  { %v283_v50 = vsel %vm270_vm2, %v1044_v48, 0.0 }
 0x317   :  { %1045 = vpow2.f32 %v281_v49  ;;  %284 = vadd.xlane.f32.xlu2 %v283_v50 }
 0x31d   :  { %v1046_v51 = vpop.eup %1045  ;;  %v1005_v52 = vpop.permute.xlu0 %1004 }
 0x31e   :  { %v286_v53 = vsel %vm270_vm2, %v1046_v51, 0.0  ;;  %v1006_v54 = vunpack.i.l.bf16 %v1005_v52  ;;  %v1007_v55 = vunpack.i.h.bf16 %v1005_v52 }
 0x31f   :  { %287 = vadd.xlane.f32.xlu1 %v286_v53 }
 0x320   :  { %319 = vmatpush.msra.mxu2 %v1006_v54 }
 0x322   :  { %320 = vmatpush.msra.mxu2 %v1007_v55 }
 0x325   :  { %v333_v56 = vpop.permute.xlu0 %332 }
 0x32d   :  { %v329_v57 = vpop.permute.xlu0 %328 }
 0x32f   :  { %490 = vrot.lane.b32.xlu2 %v1319_v28, %s1173_s25 }
 0x335   :  { %v620_v58 = vpop.permute.xlu0 %619 }
 0x336   :  { %969 = vmatpush.xpose.msk.msra.mxu1 %vm236_vm15, %v620_v58 }
 0x337   :  { %615 = vrot.lane.b32.xlu2 %v1319_v28, %s1172_s24 }
 0x338   :  { %334 = vrot.lane.b32.xlu1 %v1319_v28, %s1169_s19 }
 0x33d   :  { %v618_v59 = vpop.permute.xlu0 %617 }
 0x33e   :  { %970 = vmatpush.xpose.msk.msra.mxu1 %vm236_vm15, %v618_v59 }
 0x340   :  { %330 = vrot.lane.b32.xlu1 %v1319_v28, %s1170_s20 }
 0x345   :  { %v614_v14 = vpop.permute.xlu0 %613 }
 0x348   :  { %488 = vrot.lane.b32.xlu1 %v1322_v31, %s1173_s25 }
 0x350   :  { %484 = vrot.lane.b32.xlu1 %v1322_v31, %s1174_s26 }
 0x358   :  { %486 = vrot.lane.b32.xlu1 %v1319_v28, %s1174_s26 }
 0x38a   :  { %v285_v60 = vpop.xlane.xlu2 %284 }
 0x38b   :  { %1047 = vrcp.f32 %v285_v60 }
 0x391   :  { %v1048_v61 = vpop.eup %1047 }
 0x392   :  { %v288_v62 = vpop.xlane.xlu1 %287  ;;  %v291_v63 = vmul.f32 %v1048_v61, %v1044_v48  ;;  %v491_v5 = vpop.permute.xlu2 %490 }
 0x393   :  { %1049 = vrcp.f32 %v288_v62 }
 0x394   :  { %949 = vmatmul.msk.f32.vlgmr.msra.gmra.mxu2 %vm270_vm2, %v291_v63 }
 0x399   :  { %v1050_v1 = vpop.eup %1049 }
 0x39a   :  { %v292_v3 = vmul.f32 %v1050_v1, %v1046_v51  ;;  %v616_v15 = vpop.permute.xlu2 %615 }
 0x39c   :  { %950 = vmatmul.msk.f32.gmra.mxu2 %vm270_vm2, %v292_v3 }
 0x3aa   :  { %v335_v4 = vpop.permute.xlu1 %334 }
 0x3ab   :  { %951 = vmatpush.xpose.msk.msrb.mxu3 %vm236_vm15, %v335_v4 }
 0x3af   :  { %952 = vmatpush.xpose.msk.msrb.mxu3 %vm236_vm15, %v333_v56 }
 0x3b2   :  { %953 = vmatmul.msk.f32.vlgmr.msrb.gmra.mxu3 %vm236_vm15, %v329_v57  ;;  %v331_v6 = vpop.permute.xlu1 %330 }
 0x3b3   :  { %961 = vmatpush.xpose.msk.msra.mxu3 %vm236_vm15, %v491_v5 }
 0x3ba   :  { %954 = vmatmul.msk.f32.gmra.mxu3 %vm236_vm15, %v331_v6  ;;  %v489_v7 = vpop.permute.xlu1 %488 }
 0x3bb   :  { %962 = vmatpush.xpose.msk.msra.mxu3 %vm236_vm15, %v489_v7 }
 0x3c2   :  { %v485_v8 = vpop.permute.xlu1 %484 }
 0x3c3   :  { %963 = vmatmul.msk.f32.vlgmr.msra.gmra.mxu3 %vm236_vm15, %v485_v8 }
 0x3ca   :  { %v487_v9 = vpop.permute.xlu1 %486 }
 0x3cb   :  { %964 = vmatmul.msk.f32.gmra.mxu3 %vm236_vm15, %v487_v9 }
 0x417   :  { %v322_v11 = vpop.f32.mrf.mxu2 }
 0x418   :  { %959 = vmatmul.msk.f32.vlgmr.msrb.gmra.mxu1 %vm236_vm15, %v322_v11 }
 0x41f   :  { %v325_v12 = vpop.f32.mrf.mxu2 }
 0x420   :  { %960 = vmatmul.msk.f32.gmra.mxu1 %vm236_vm15, %v325_v12 }
 0x428   :  { %971 = vmatmul.msk.f32.vlgmr.msra.gmra.mxu1 %vm236_vm15, %v614_v14 }
 0x430   :  { %972 = vmatmul.msk.f32.gmra.mxu1 %vm236_vm15, %v616_v15 }
 0x435   :  { %v361_v16 = vpop.f32.mrf.mxu3 }
 0x436   :  { %v367_v17 = vsel %vm84_vm1, %v361_v16, -1e+09 }
 0x437   :  { %v369_v19 = vsel %vm270_vm2, %v367_v17, -inf }
 0x438   :  { %370 = vmax.xlane.f32.xlu0 %v369_v19 }
 0x43d   :  { %v364_v20 = vpop.f32.mrf.mxu3 }
 0x43e   :  { %v368_v13 = vsel %vm85_vm3, %v364_v20, -1e+09 }
 0x43f   :  { %v372_v21 = vsel %vm270_vm2, %v368_v13, -inf }
 0x440   :  { %373 = vmax.xlane.f32.xlu1 %v372_v21 }
 0x446   :  { %v517_v22 = vpop.f32.mrf.mxu3 }
 0x447   :  { %v523_v23 = vsel %vm84_vm1, %v517_v22, -1e+09  ;;  %v227_v22 = vld [vmem:[%s1534_s4 + $0x8] sm:$0xff] }
 0x448   :  { %v525_v24 = vsel %vm270_vm2, %v523_v23, -inf  ;;  %447 = vmatpush.msrb.mxu0 %v227_v22 }
 0x449   :  { %526 = vmax.xlane.f32.xlu0 %v525_v24 }
 0x44e   :  { %v520_v25 = vpop.f32.mrf.mxu3 }
 0x44f   :  { %v524_v26 = vsel %vm85_vm3, %v520_v25, -1e+09  ;;  %v229_v25 = vld [vmem:[%s1534_s4 + $0x18] sm:$0xff] }
 0x450   :  { %v528_v27 = vsel %vm270_vm2, %v524_v26, -inf }
 0x451   :  { %529 = vmax.xlane.f32.xlu1 %v528_v27 }
 0x495   :  { %v1397_v28 = vpop.f32.mrf.mxu1 }
 0x49d   :  { %v1399_v30 = vpop.f32.mrf.mxu1 }
 0x4a5   :  { %v646_v31 = vpop.f32.mrf.mxu1 }
 0x4a6   :  { %v652_v18 = vsel %vm84_vm1, %v646_v31, -1e+09  ;;  %vm889_vm1 = vcmask 523264  }
 0x4a7   :  { %v654_v32 = vsel %vm270_vm2, %v652_v18, -inf }
 0x4a8   :  { %655 = vmax.xlane.f32.xlu2 %v654_v32 }
 0x4ab   :  { %v371_v34 = vpop.xlane.xlu0 %370 }
 0x4ac   :  { %v375_v35 = vsub.f32 %v367_v17, %v371_v34 }
 0x4ad   :  { %v649_v36 = vpop.f32.mrf.mxu1 }
 0x4ae   :  { %v377_v38 = vmul.f32 1.442695, %v375_v35  ;;  %v653_v39 = vsel %vm85_vm3, %v649_v36, -1e+09 }
 0x4af   :  { %v657_v40 = vsel %vm270_vm2, %v653_v39, -inf }
 0x4b0   :  { %1051 = vpow2.f32 %v377_v38  ;;  %658 = vmax.xlane.f32.xlu2 %v657_v40 }
 0x4b3   :  { %v374_v42 = vpop.xlane.xlu1 %373 }
 0x4b4   :  { %v376_v43 = vsub.f32 %v368_v13, %v374_v42 }
 0x4b6   :  { %v1052_v44 = vpop.eup %1051  ;;  %v379_v45 = vmul.f32 1.442695, %v376_v43 }
 0x4b7   :  { %v381_v33 = vsel %vm270_vm2, %v1052_v44, 0.0 }
 0x4b8   :  { %1053 = vpow2.f32 %v379_v45  ;;  %382 = vadd.xlane.f32.xlu0 %v381_v33 }
 0x4bc   :  { %v527_v46 = vpop.xlane.xlu0 %526 }
 0x4bd   :  { %v531_v47 = vsub.f32 %v523_v23, %v527_v46 }
 0x4be   :  { %v1054_v48 = vpop.eup %1053 }
 0x4bf   :  { %v533_v49 = vmul.f32 1.442695, %v531_v47  ;;  %v384_v50 = vsel %vm270_vm2, %v1054_v48, 0.0 }
 0x4c0   :  { %385 = vadd.xlane.f32.xlu1 %v384_v50 }
 0x4c1   :  { %1055 = vpow2.f32 %v533_v49 }
 0x4c4   :  { %v530_v55 = vpop.xlane.xlu1 %529 }
 0x4c5   :  { %v532_v59 = vsub.f32 %v524_v26, %v530_v55 }
 0x4c7   :  { %v1056_v37 = vpop.eup %1055  ;;  %v535_v62 = vmul.f32 1.442695, %v532_v59 }
 0x4c8   :  { %1009 = vrot.lane.b32.xlu2 %v1345_v41, %s1175_s27  ;;  %v537_v51 = vsel %vm270_vm2, %v1056_v37, 0.0 }
 0x4c9   :  { %538 = vadd.xlane.f32.xlu1 %v537_v51 }
 0x4d0   :  { %1019 = vrot.lane.b32.xlu2 %v1345_v41, %s1176_s28 }
 0x51b   :  { %v656_v52 = vpop.xlane.xlu2 %655 }
 0x51c   :  { %v660_v53 = vsub.f32 %v652_v18, %v656_v52  ;;  %v1026_v52 = vld [vmem:[%s1535_s5] ss:$0 sm:$0xff] }
 0x51e   :  { %v662_v54 = vmul.f32 1.442695, %v660_v53 }
 0x520   :  { %1057 = vpow2.f32 %v662_v54 }
 0x523   :  { %v659_v56 = vpop.xlane.xlu2 %658 }
 0x524   :  { %v661_v57 = vsub.f32 %v653_v39, %v659_v56 }
 0x526   :  { %v1058_v58 = vpop.eup %1057  ;;  %v664_v60 = vmul.f32 1.442695, %v661_v57 }
 0x527   :  { %v666_v61 = vsel %vm270_vm2, %v1058_v58, 0.0 }
 0x528   :  { %1059 = vpow2.f32 %v664_v60  ;;  %667 = vadd.xlane.f32.xlu0 %v666_v61 }
 0x52b   :  { %v1010_v63 = vpop.permute.xlu2 %1009  ;;  %v383_v1 = vpop.xlane.xlu0 %382 }
 0x52c   :  { %1061 = vrcp.f32 %v383_v1  ;;  %v1011_v3 = vunpack.i.l.bf16 %v1010_v63  ;;  %v1012_v5 = vunpack.i.h.bf16 %v1010_v63 }
 0x52d   :  { %1063 = vpow2.f32 %v535_v62 }
 0x52e   :  { %v1060_v4 = vpop.eup %1059  ;;  %417 = vmatpush.msrb.mxu2 %v1011_v3 }
 0x52f   :  { %v669_v6 = vsel %vm270_vm2, %v1060_v4, 0.0 }
 0x530   :  { %418 = vmatpush.msrb.mxu2 %v1012_v5  ;;  %670 = vadd.xlane.f32.xlu1 %v669_v6 }
 0x532   :  { %v1062_v7 = vpop.eup %1061 }
 0x533   :  { %v1020_v8 = vpop.permute.xlu2 %1019  ;;  %v386_v9 = vpop.xlane.xlu1 %385  ;;  %v389_v11 = vmul.f32 %v1062_v7, %v1052_v44 }
 0x534   :  { %v1064_v12 = vpop.eup %1063  ;;  %v1021_v14 = vunpack.i.l.bf16 %v1020_v8  ;;  %1065 = vrcp.f32 %v386_v9  ;;  %v1022_v15 = vunpack.i.h.bf16 %v1020_v8  ;;  %v841_v8 = vld [vmem:[%s1538_s8 + $0x18] sm:$0xff]  ;;  %v840_v9 = vld [vmem:[%s1538_s8 + $0x10] sm:$0xff] }
 0x535   :  { %955 = vmatmul.msk.f32.vlgmr.msrb.gmra.mxu2 %vm270_vm2, %v389_v11  ;;  %v540_v16 = vsel %vm270_vm2, %v1064_v12, 0.0 }
 0x536   :  { %573 = vmatpush.msra.mxu2 %v1021_v14 }
 0x538   :  { %574 = vmatpush.msra.mxu2 %v1022_v15  ;;  %541 = vadd.xlane.f32.xlu1 %v540_v16 }
 0x53a   :  { %v1066_v17 = vpop.eup %1065  ;;  %732 = vmatpush.msrb.mxu2 %v229_v25 }
 0x53b   :  { %v390_v19 = vmul.f32 %v1066_v17, %v1054_v48 }
 0x53c   :  { %1014 = vrot.lane.b32.xlu0 %v1345_v41, %s1177_s29  ;;  %v539_v20 = vpop.xlane.xlu1 %538  ;;  %v228_v41 = vld [vmem:[%s1534_s4 + $0x10] sm:$0xff] }
 0x53d   :  { %1067 = vrcp.f32 %v539_v20  ;;  %956 = vmatmul.msk.f32.gmra.mxu2 %vm270_vm2, %v390_v19  ;;  %603 = vmatpush.msra.mxu0 %v228_v41 }
 0x543   :  { %v1068_v13 = vpop.eup %1067 }
 0x544   :  { %v545_v21 = vmul.f32 %v1068_v13, %v1056_v37 }
 0x546   :  { %965 = vmatmul.msk.f32.vlgmr.msra.gmra.mxu2 %vm270_vm2, %v545_v21 }
 0x59b   :  { %v668_v24 = vpop.xlane.xlu0 %667 }
 0x59c   :  { %1069 = vrcp.f32 %v668_v24 }
 0x5a2   :  { %v1070_v31 = vpop.eup %1069 }
 0x5a3   :  { %v671_v23 = vpop.xlane.xlu1 %670  ;;  %v674_v35 = vmul.f32 %v1070_v31, %v1058_v58 }
 0x5ab   :  { %v542_v26 = vpop.xlane.xlu1 %541 }
 0x5ac   :  { %1071 = vrcp.f32 %v542_v26 }
 0x5ad   :  { %1073 = vrcp.f32 %v671_v23 }
 0x5ae   :  { %v1015_v27 = vpop.permute.xlu0 %1014 }
 0x5af   :  { %v1016_v18 = vunpack.i.l.bf16 %v1015_v27  ;;  %v1017_v32 = vunpack.i.h.bf16 %v1015_v27 }
 0x5b1   :  { %702 = vmatpush.msrb.mxu3 %v1016_v18 }
 0x5b2   :  { %v1072_v34 = vpop.eup %1071 }
 0x5b3   :  { %703 = vmatpush.msrb.mxu3 %v1017_v32  ;;  %v546_v36 = vmul.f32 %v1072_v34, %v1064_v12  ;;  %v1074_v38 = vpop.eup %1073  ;;  %v838_v12 = vld [vmem:[%s1538_s8] sm:$0xff]  ;;  %v883_v32 = vld [vmem:[%s1540_s10 + $0x30] sm:$0xff] }
 0x5b4   :  { %973 = vmatmul.msk.f32.vlgmr.msrb.gmra.mxu3 %vm270_vm2, %v674_v35  ;;  %v675_v40 = vmul.f32 %v1074_v38, %v1060_v4 }
 0x5b5   :  { %966 = vmatmul.msk.f32.gmra.mxu2 %vm270_vm2, %v546_v36  ;;  %v882_v36 = vld [vmem:[%s1540_s10 + $0x28] sm:$0xff] }
 0x5b8   :  { %v420_v39 = vpop.f32.mrf.mxu2 }
 0x5b9   :  { %957 = vmatmul.msk.f32.vlgmr.msrb.gmra.mxu0 %vm236_vm15, %v420_v39  ;;  %v881_v39 = vld [vmem:[%s1540_s10 + $0x20] sm:$0xff] }
 0x5ba   :  { %864 = vmatpush.msrb.mxu0 %v841_v8 }
 0x5bc   :  { %974 = vmatmul.msk.f32.gmra.mxu3 %vm270_vm2, %v675_v40  ;;  %865 = vmatpush.msrb.mxu0 %v840_v9 }
 0x5c0   :  { %v423_v42 = vpop.f32.mrf.mxu2 }
 0x5c1   :  { %958 = vmatmul.msk.f32.gmra.mxu0 %vm236_vm15, %v423_v42 }
 0x5c9   :  { %v576_v43 = vpop.f32.mrf.mxu2 }
 0x5ca   :  { %967 = vmatmul.msk.f32.vlgmr.msra.gmra.mxu0 %vm236_vm15, %v576_v43  ;;  %v880_v43 = vld [vmem:[%s1540_s10 + $0x18] sm:$0xff] }
 0x636   :  { %v449_v46 = vpop.f32.mrf.mxu0 }
 0x637   :  { %v705_v44 = vpop.f32.mrf.mxu3  ;;  %v479_v49 = vadd.f32 %v1397_v28, %v449_v46 }
 0x638   :  { %v579_v45 = vpop.f32.mrf.mxu2  ;;  %975 = vmatmul.msk.f32.vlgmr.msrb.gmra.mxu2 %vm236_vm15, %v705_v44 }
 0x639   :  { %968 = vmatmul.msk.f32.gmra.mxu0 %vm236_vm15, %v579_v45 }
 0x63e   :  { %v452_v47 = vpop.f32.mrf.mxu0 }
 0x63f   :  { %v708_v33 = vpop.f32.mrf.mxu3  ;;  %v482_v55 = vadd.f32 %v1399_v30, %v452_v47 }
 0x640   :  { %976 = vmatmul.msk.f32.gmra.mxu2 %vm236_vm15, %v708_v33 }
 0x647   :  { %v605_v48 = vpop.f32.mrf.mxu0 }
 0x648   :  { %v611_v50 = vadd.f32 %v605_v48, %v479_v49 }
 0x6b6   :  { %v608_v54 = vpop.f32.mrf.mxu0 }
 0x6b7   :  { %v612_v57 = vadd.f32 %v608_v54, %v482_v55 }
 0x6bb   :  { %v734_v37 = vpop.f32.mrf.mxu2 }
 0x6bc   :  { %v740_v51 = vadd.f32 %v734_v37, %v611_v50  ;;  %v1027_v50 = vld [vmem:[%s1542_s12] ss:$0 sm:$0xff] }
 0x6be   :  { %v742_v53 = vadd.f32 %v740_v51, %v1270_v2 }
 0x6c0   :  { %v1443_v56 = vadd.f32 %v1026_v52, %v742_v53 }
 0x6c2   :  { %v752_v58 = vsel %vm88_vm0, %v1443_v56, 0.0 }
 0x6c3   :  { %753 = vadd.xlane.f32.xlu0 %v752_v58  ;;  %v737_v28 = vpop.f32.mrf.mxu2  ;;  %v1028_v58 = vld [vmem:[%s1543_s13] ss:$0 sm:$0xff] }
 0x6c4   :  { %v741_v59 = vadd.f32 %v737_v28, %v612_v57 }
 0x6c6   :  { %v743_v60 = vadd.f32 %v741_v59, %v1266_v0 }
 0x6c8   :  { %v1448_v61 = vadd.f32 %v1026_v52, %v743_v60 }
 0x6ca   :  { %v755_v62 = vsel %vm88_vm0, %v1448_v61, 0.0 }
 0x6cb   :  { %756 = vadd.xlane.f32.xlu2 %v755_v62 }
 0x736   :  { %v754_v2 = vpop.xlane.xlu0 %753 }
 0x737   :  { %v758_v30 = vmul.f32 %v754_v2, %v1274_v10 }
 0x739   :  { %v1454_v63 = vsub.f32 %v1443_v56, %v758_v30 }
 0x73b   :  { %v762_v1 = vmul.f32 %v1454_v63, %v1454_v63  ;;  %v799_v55 = vmul.f32 %v1027_v50, %v1454_v63 }
 0x73d   :  { %v764_v3 = vsel %vm88_vm0, %v762_v1, 0.0 }
 0x73e   :  { %765 = vadd.xlane.f32.xlu1 %v764_v3  ;;  %v757_v4 = vpop.xlane.xlu2 %756 }
 0x73f   :  { %v759_v0 = vmul.f32 %v757_v4, %v1274_v10  ;;  %v839_v10 = vld [vmem:[%s1538_s8 + $0x8] sm:$0xff] }
 0x740   :  { %866 = vmatpush.msrb.mxu0 %v839_v10  ;;  %v879_v10 = vld [vmem:[%s1540_s10 + $0x10] sm:$0xff] }
 0x741   :  { %v1461_v5 = vsub.f32 %v1448_v61, %v759_v0 }
 0x742   :  { %867 = vmatpush.msrb.mxu0 %v838_v12  ;;  %v1029_v12 = vld [vmem:[%s1539_s9] ss:$0 sm:$0xff]  ;;  %s1178_s9 = smov [#allocation7]  }
 0x743   :  { %v763_v6 = vmul.f32 %v1461_v5, %v1461_v5  ;;  %v800_v0 = vmul.f32 %v1027_v50, %v1461_v5  ;;  %v877_v5 = vld [vmem:[%s1540_s10] sm:$0xff] }
 0x745   :  { %v767_v7 = vsel %vm88_vm0, %v763_v6, 0.0 }
 0x746   :  { %768 = vadd.xlane.f32.xlu1 %v767_v7 }
 0x7b1   :  { %v766_v11 = vpop.xlane.xlu1 %765 }
 0x7b2   :  { %v770_v14 = vmul.f32 %v766_v11, %v1296_v29  ;;  %v878_v11 = vld [vmem:[%s1540_s10 + $0x8] sm:$0xff] }
 0x7b4   :  { %1075 = vrsqrt.f32 %v770_v14  ;;  %vm779_vm4 = vcmp.eq.f32.partialorder %v770_v14, inf  ;;  %v782_v26 = vand.u32 2147483648, %v770_v14  ;;  %vm781_vm5 = vcmp.eq.f32.partialorder %v770_v14, 0.0 }
 0x7b9   :  { %v769_v15 = vpop.xlane.xlu1 %768 }
 0x7ba   :  { %v1076_v16 = vpop.eup %1075  ;;  %v771_v17 = vmul.f32 %v769_v15, %v1296_v29  ;;  %v884_v29 = vld [vmem:[%s1540_s10 + $0x38] sm:$0xff]  ;;  %s927_s10 = sshll.u32 %s1178_s9, 4  ;;  %s928_s10 = int_to_ptr.vmem [resolvable:$true] %s927_s10 }
 0x7bb   :  { %v773_v19 = vmul.f32 %v1076_v16, %v770_v14  ;;  %904 = vmatpush.msrb.mxu1 %v884_v29 }
 0x7bc   :  { %1077 = vrsqrt.f32 %v771_v17  ;;  %vm791_vm6 = vcmp.eq.f32.partialorder %v771_v17, inf  ;;  %v794_v42 = vand.u32 2147483648, %v771_v17  ;;  %vm793_vm7 = vcmp.eq.f32.partialorder %v771_v17, 0.0 }
 0x7bd   :  { %v774_v20 = vmul.f32 %v1076_v16, %v773_v19  ;;  %905 = vmatpush.msrb.mxu1 %v883_v32 }
 0x7bf   :  { %v775_v13 = vmul.f32 0.5, %v774_v20  ;;  %906 = vmatpush.msrb.mxu1 %v882_v36 }
 0x7c1   :  { %v776_v21 = vsub.f32 1.5, %v775_v13  ;;  %907 = vmatpush.msrb.mxu1 %v881_v39  ;;  %v1030_v13 = vld [vmem:[%s1541_s11] ss:$0 sm:$0xff] }
 0x7c2   :  { %v1078_v22 = vpop.eup %1077 }
 0x7c3   :  { %v777_v23 = vmul.f32 %v1076_v16, %v776_v21  ;;  %v785_v24 = vmul.f32 %v1078_v22, %v771_v17  ;;  %908 = vmatpush.msrb.mxu1 %v880_v43 }
 0x7c5   :  { %v778_v41 = vmul.f32 %v777_v23, %v770_v14  ;;  %v786_v25 = vmul.f32 %v1078_v22, %v785_v24  ;;  %909 = vmatpush.msrb.mxu1 %v879_v10 }
 0x7c7   :  { %v780_v27 = vsel %vm779_vm4, %v770_v14, %v778_v41  ;;  %v787_v31 = vmul.f32 0.5, %v786_v25  ;;  %910 = vmatpush.msrb.mxu1 %v878_v11 }
 0x7c8   :  { %v783_v18 = vsel %vm781_vm5, %v782_v26, %v780_v27 }
 0x7c9   :  { %v801_v34 = vadd.f32 1e-06, %v783_v18  ;;  %v788_v35 = vsub.f32 1.5, %v787_v31  ;;  %911 = vmatpush.msrb.mxu1 %v877_v5 }
 0x7cb   :  { %1079 = vrcp.f32 %v801_v34  ;;  %v789_v38 = vmul.f32 %v1078_v22, %v788_v35  ;;  %v814_v49 = vand.u32 2147483648, %v801_v34  ;;  %v812_v51 = vand.u32 2147483647, %v801_v34 }
 0x7cc   :  { %vm808_vm9 = vweird.f32 %v801_v34 }
 0x7cd   :  { %v790_v40 = vmul.f32 %v789_v38, %v771_v17  ;;  %v815_v54 = vor.u32 1.1754944e-38, %v814_v49  ;;  %vm813_vm11 = vcmp.eq.f32.partialorder %v812_v51, 8.507059e+37 }
 0x7cf   :  { %v792_v44 = vsel %vm791_vm6, %v771_v17, %v790_v40 }
 0x7d0   :  { %v795_v45 = vsel %vm793_vm7, %v794_v42, %v792_v44 }
 0x7d1   :  { %v1080_v33 = vpop.eup %1079  ;;  %v802_v46 = vadd.f32 1e-06, %v795_v45 }
 0x7d2   :  { %v804_v47 = vmul.f32 %v1080_v33, %v801_v34  ;;  %vm809_vm8 = vweird.f32 %v1080_v33 }
 0x7d3   :  { %1081 = vrcp.f32 %v802_v46  ;;  %vm810_vm10 = vmor %vm808_vm9, %vm809_vm8  ;;  %v829_v2 = vand.u32 2147483648, %v802_v46  ;;  %v827_v3 = vand.u32 2147483647, %v802_v46  ;;  %vm823_vm13 = vweird.f32 %v802_v46 }
 0x7d4   :  { %v805_v48 = vsub.f32 1.0, %v804_v47 }
 0x7d5   :  { %v830_v63 = vor.u32 1.1754944e-38, %v829_v2  ;;  %vm828_vm15 = vcmp.eq.f32.partialorder %v827_v3, 8.507059e+37 }
 0x7d6   :  { %v806_v37 = vmul.f32 %v1080_v33, %v805_v48 }
 0x7d8   :  { %v807_v52 = vadd.f32 %v1080_v33, %v806_v37 }
 0x7d9   :  { %v1082_v53 = vpop.eup %1081 }
 0x7da   :  { %v811_v57 = vsel %vm810_vm10, %v1080_v33, %v807_v52  ;;  %v819_v28 = vmul.f32 %v1082_v53, %v802_v46  ;;  %vm824_vm12 = vweird.f32 %v1082_v53 }
 0x7db   :  { %v816_v59 = vsel %vm813_vm11, %v815_v54, %v811_v57  ;;  %vm825_vm14 = vmor %vm823_vm13, %vm824_vm12 }
 0x7dc   :  { %v817_v60 = vmul.f32 %v816_v59, %v799_v55  ;;  %v820_v62 = vsub.f32 1.0, %v819_v28 }
 0x7de   :  { %v836_v30 = vadd.f32 %v1028_v58, %v817_v60  ;;  %v821_v1 = vmul.f32 %v1082_v53, %v820_v62 }
 0x7e0   :  { %977 = vmatmul.msk.f32.vlgmr.msrb.gmra.mxu0 %vm88_vm0, %v836_v30  ;;  %v822_v4 = vadd.f32 %v1082_v53, %v821_v1 }
 0x7e2   :  { %v826_v6 = vsel %vm825_vm14, %v1082_v53, %v822_v4 }
 0x7e3   :  { %v831_v7 = vsel %vm828_vm15, %v830_v63, %v826_v6 }
 0x7e4   :  { %v832_v8 = vmul.f32 %v831_v7, %v800_v0 }
 0x7e6   :  { %v837_v9 = vadd.f32 %v1028_v58, %v832_v8 }
 0x7e8   :  { %978 = vmatmul.msk.f32.gmra.mxu0 %vm88_vm0, %v837_v9 }
 0x85d   :  { %v869_v14 = vpop.f32.mrf.mxu0 }
 0x85e   :  { %v870_v15 = vadd.f32 %v1029_v12, %v869_v14 }
 0x860   :  { %v875_v16 = vmax.f32 %v870_v15, 0.0 }
 0x862   :  { %979 = vmatmul.msk.f32.vlgmr.msrb.gmra.mxu1 %vm889_vm1, %v875_v16 }
 0x865   :  { %v872_v17 = vpop.f32.mrf.mxu0 }
 0x866   :  { %v873_v19 = vadd.f32 %v1029_v12, %v872_v17 }
 0x868   :  { %v876_v20 = vmax.f32 %v873_v19, 0.0 }
 0x86a   :  { %980 = vmatmul.msk.f32.gmra.mxu1 %vm889_vm1, %v876_v20 }
 0x8df   :  { %v913_v21 = vpop.f32.mrf.mxu1 }
 0x8e0   :  { %v914_v22 = vadd.f32 %v1030_v13, %v913_v21 }
 0x8e2   :  { %v919_v23 = vadd.f32 %v914_v22, %v1443_v56 }
 0x8e4   :  { %921 = vst.msk [vmem:[#allocation7] sm:$0xff] %vm88_vm0, %v919_v23 }
 0x8e7   :  { %v916_v24 = vpop.f32.mrf.mxu1 }
 0x8e8   :  { %v917_v41 = vadd.f32 %v1030_v13, %v916_v24 }
 0x8ea   :  { %v920_v25 = vadd.f32 %v917_v41, %v1448_v61 }
 0x8ec   :  { %922 = vst.msk [vmem:[#allocation7 + $0x8] sm:$0xff] %vm88_vm0, %v920_v25 }
 0x8ed   :  { %935 = dma.vmem_to_hbm [thread:$0]  %s928_s10, 256, %s930_s1, [#allocation4], %s1162_s21, %s1162_s21, %s1163_s22  }
 0x8ee   :  { %1159 = dma.done.wait [#allocation4], 256  }
 0x8ef   :  { %1160 = vsyncadd [#allocation4], 4294967040 }
 0x8f0   :  { %940 = vsyncpa [#allocation3], 1 }
 0x8f1   :  { %941 = vsyncpa [#allocation6], 1 }
 0x8f2   :  { %942 = vsyncpa [#allocation4], 1 }

</bundles_post_ra>
